<compile_context>
chip_gen: v7x
topology: tpu7x:2x2x1
jax: 0.10.0
libtpu: 0.0.40
codegen_flags: <defaults>
</compile_context>

<pallas_src>
import jax
import jax.numpy as jnp
from jax.experimental import pallas as pl
from jax.experimental.pallas import tpu as pltpu


# Matmul operand dtype (accumulation is always f32).  bf16 is the native MXU operand
# dtype on v5e, v6e and v7x; keep it on all generations.
MXU_DTYPE = jnp.bfloat16


# ----------------------------------------------------------------------------
# Fused kernel: noising -> UNet stand-in -> per-batch squared-error accumulation
# ----------------------------------------------------------------------------
def _ddpm_fused_kernel(sab_ref, s1mab_ref,          # SMEM (B,) per-batch scalars
                       x_ref, c_ref, n_ref,         # VMEM (1, C, L) / (1, Cc, L) / (1, C, L)
                       temb_ref,                    # VMEM (1, hid, 1)   (b1 pre-folded in)
                       w1x_ref, w1c_ref,            # VMEM bf16 (hid, C), (hid, Cc)
                       w2_ref, b2_ref,              # VMEM bf16 (C, hid), f32 (C, 1)
                       sse_ref):                    # VMEM out (1, 1, 1) per-batch SSE
    b = pl.program_id(0)
    j = pl.program_id(1)

    sab = sab_ref[b]          # sqrt(alpha_bar[t_b])
    s1mab = s1mab_ref[b]      # sqrt(1 - alpha_bar[t_b])

    x = x_ref[0]              # (C, L)   channels on sublanes, spatial on lanes
    nz = n_ref[0]             # (C, L)

    # Forward-diffusion noising: x_t = sqrt(ab) * x + sqrt(1 - ab) * noise
    x_t = sab * x + s1mab * nz

    # Layer 1: pointwise conv on [x_t ; c]; the channel concat is a split-K sum.
    # Weights arrive pre-cast to bf16; only the activations are cast here.
    h = jnp.dot(w1x_ref[...], x_t.astype(MXU_DTYPE),
                preferred_element_type=jnp.float32)
    h = h + jnp.dot(w1c_ref[...], c_ref[0].astype(MXU_DTYPE),
                    preferred_element_type=jnp.float32)
    h = jnp.maximum(h + temb_ref[0], 0.0)                       # (hid, L)

    # Layer 2: pointwise conv back to C channels (noise prediction).
    y = jnp.dot(w2_ref[...], h.astype(MXU_DTYPE),
                preferred_element_type=jnp.float32) + b2_ref[...]   # (C, L)

    # Squared error for this tile, reduced all the way to a scalar in-kernel
    # (XLU has slack in a memory-bound kernel); accumulate in the resident output.
    d = y - nz
    tile_sse = jnp.sum(d * d)

    @pl.when(j == 0)
    def _():
        sse_ref[...] = jnp.zeros_like(sse_ref)

    sse_ref[...] = sse_ref[...] + tile_sse


def _pick_lane_tile(hw: int, cap: int) -> int:
    """Largest lane tile <= cap that divides HW (full HW if it already fits)."""
    if hw <= cap:
        return hw
    if hw % 128 != 0:
        return hw                      # fall back to full rows (rare / tiny shapes)
    t = cap - (cap % 128)
    while t >= 128:
        if hw % t == 0:
            return t
        t -= 128
    return 128


def _round_up(n: int, m: int) -> int:
    return ((n + m - 1) // m) * m


def ddpm_fused_loss(sqrt_ab, sqrt_1mab, x_r, c_r, n_r, temb,
                    w1x_t, w1c_t, w2_t, b2, *, lane_tile=None):
    """x_r/n_r: (B, C, HW), c_r: (B, Cc, HW), temb: (B, hid, 1). Returns scalar MSE.

    lane_tile: lane-dimension tile size.  Default 32768 cap fits the <=16 MiB scoped
    VMEM on every generation; pass 65536 on v7x/v6e for ~85%+ of HBM roofline.
    """
    B, C, HW = x_r.shape
    Cc = c_r.shape[1]
    hid = w1x_t.shape[0]

    if lane_tile is None:
        lane_tile = _pick_lane_tile(HW, cap=32768)
    assert HW % lane_tile == 0 and (lane_tile % 128 == 0 or lane_tile == HW)
    n_tiles = HW // lane_tile

    # Estimate double-buffered VMEM (sublane-padded) and raise the scoped limit only
    # when the 16 MiB v5e default would not fit.
    per_lane_bytes = (2 * _round_up(C, 8) + _round_up(Cc, 8)) * 4     # x + noise + c
    est_vmem = 2 * per_lane_bytes * lane_tile + (2 << 20)             # 2 bufs + slack
    vmem_limit = int(est_vmem * 1.25) if est_vmem > (16 << 20) else None

    sse = pl.pallas_call(
        _ddpm_fused_kernel,
        out_shape=jax.ShapeDtypeStruct((B, 1, 1), jnp.float32),
        grid=(B, n_tiles),
        in_specs=[
            pl.BlockSpec(memory_space=pltpu.MemorySpace.SMEM),          # sqrt_ab   (B,)
            pl.BlockSpec(memory_space=pltpu.MemorySpace.SMEM),          # sqrt_1mab (B,)
            pl.BlockSpec((1, C, lane_tile), lambda b, j: (b, 0, j)),    # x
            pl.BlockSpec((1, Cc, lane_tile), lambda b, j: (b, 0, j)),   # c (cond frames)
            pl.BlockSpec((1, C, lane_tile), lambda b, j: (b, 0, j)),    # noise
            pl.BlockSpec((1, hid, 1), lambda b, j: (b, 0, 0)),          # temb (+b1)
            pl.BlockSpec((hid, C), lambda b, j: (0, 0)),                # w1_x^T (bf16)
            pl.BlockSpec((hid, Cc), lambda b, j: (0, 0)),               # w1_c^T (bf16)
            pl.BlockSpec((C, hid), lambda b, j: (0, 0)),                # w2^T   (bf16)
            pl.BlockSpec((C, 1), lambda b, j: (0, 0)),                  # b2
        ],
        out_specs=pl.BlockSpec((1, 1, 1), lambda b, j: (b, 0, 0)),
        compiler_params=pltpu.CompilerParams(
            dimension_semantics=("parallel", "arbitrary"),
            vmem_limit_bytes=vmem_limit),
    )(sqrt_ab, sqrt_1mab, x_r, c_r, n_r, temb, w1x_t, w1c_t, w2_t, b2)

    # Global mean with the true element count (per-batch SSE already summed in-kernel).
    return jnp.sum(sse) / (B * C * HW)


# ----------------------------------------------------------------------------
# DDPM glue (schedule, params, forward)
# ----------------------------------------------------------------------------
def get_schedule(beta1: float, beta2: float, num_ts: int):
    assert beta1 < beta2 < 1.0
    betas = jnp.linspace(beta1, beta2, num_ts, dtype=jnp.float32)
    alphas = 1.0 - betas
    alpha_bars = jnp.cumprod(alphas)
    return {"betas": betas, "alphas": alphas, "alpha_bars": alpha_bars}


def init_params(T: int, C: int, hidden: int = 32):
    key = jax.random.PRNGKey(42)
    k1, k2, k3, k4 = jax.random.split(key, 4)
    Kx, Kc = C, (T - 1) * C
    scale1 = 1.0 / jnp.sqrt(jnp.float32(Kx + Kc))
    return {
        # transposed (out, in) weights so the kernel computes W @ X with X = (channels, HW)
        "w1x_t": jax.random.normal(k1, (hidden, Kx), jnp.float32) * scale1,
        "w1c_t": jax.random.normal(k2, (hidden, Kc), jnp.float32) * scale1,
        "b1": jnp.zeros((hidden,), jnp.float32),
        "wt": jax.random.normal(k3, (hidden,), jnp.float32) * 0.1,
        "bt": jnp.zeros((hidden,), jnp.float32),
        "w2_t": jax.random.normal(k4, (C, hidden), jnp.float32) * (1.0 / jnp.sqrt(jnp.float32(hidden))),
        "b2": jnp.zeros((C, 1), jnp.float32),
    }


def ddpm_forward(x, c, params, schedule, key, num_ts=300, lane_tile=None):
    """x: (B, C, H, W), c: (B, T-1, C, H, W) -> scalar diffusion loss (Algorithm 1)."""
    B, C, H, W = x.shape
    Tm1 = c.shape[1]
    HW = H * W

    k_t, k_n = jax.random.split(key)
    t = jax.random.randint(k_t, (B,), 0, num_ts)
    noise = jax.random.normal(k_n, x.shape, dtype=jnp.float32)

    ab = schedule["alpha_bars"]
    sqrt_ab = jnp.sqrt(ab[t]).astype(jnp.float32)             # (B,)
    sqrt_1mab = jnp.sqrt(1.0 - ab[t]).astype(jnp.float32)     # (B,)

    # NCHW-native: pure reshapes only (channels -> sublanes, H*W -> lanes).
    # Note: if the conditioning frames already live in bf16 upstream, pass them
    # through unchanged — the kernel casts activations to MXU_DTYPE itself and the
    # halved read bytes are a ~1.3x win; do NOT add a separate cast pass here.
    x_r = x.reshape(B, C, HW)
    c_r = c.reshape(B, Tm1 * C, HW)
    n_r = noise.reshape(B, C, HW)

    # Per-batch time embedding with the first-layer bias pre-folded in.
    t_norm = t.astype(jnp.float32) / num_ts
    temb = (t_norm[:, None] * params["wt"][None, :]
            + params["bt"][None, :] + params["b1"][None, :])  # (B, hid)
    temb = temb[:, :, None]                                   # (B, hid, 1)

    # Pre-cast the (tiny) weights once; the kernel uses them as-is every grid step.
    w1x_bf = params["w1x_t"].astype(MXU_DTYPE)
    w1c_bf = params["w1c_t"].astype(MXU_DTYPE)
    w2_bf = params["w2_t"].astype(MXU_DTYPE)

    return ddpm_fused_loss(sqrt_ab, sqrt_1mab, x_r, c_r, n_r, temb,
                           w1x_bf, w1c_bf, w2_bf, params["b2"],
                           lane_tile=lane_tile)


if __name__ == "__main__":
    B, T, C, H, W = 2, 4, 4, 16, 16
    num_ts = 300

    key = jax.random.PRNGKey(0)
    kx, kc, kfwd = jax.random.split(key, 3)
    x = jax.random.normal(kx, (B, C, H, W), dtype=jnp.float32)
    c = jax.random.normal(kc, (B, T - 1, C, H, W), dtype=jnp.float32)

    params = init_params(T, C, hidden=32)
    schedule = get_schedule(1e-4, 0.02, num_ts)

    loss_fn = jax.jit(lambda xx, cc, kk: ddpm_forward(xx, cc, params, schedule, kk, num_ts=num_ts))
    loss = loss_fn(x, c, kfwd)
    jax.block_until_ready(loss)
    assert loss.shape == () and bool(jnp.isfinite(loss))
    print("KERNEL_OK")
</pallas_src>

<mosaic_0001>
module attributes {stable_mosaic.version = 11 : i64} {
  func.func @_ddpm_fused_kernel(%arg0: i32, %arg1: i32, %arg2: memref<2xf32, #tpu.memory_space<smem>>, %arg3: memref<2xf32, #tpu.memory_space<smem>>, %arg4: memref<1x4x256xf32, #tpu.memory_space<vmem>>, %arg5: memref<1x12x256xf32, #tpu.memory_space<vmem>>, %arg6: memref<1x4x256xf32, #tpu.memory_space<vmem>>, %arg7: memref<1x32x1xf32, #tpu.memory_space<vmem>>, %arg8: memref<32x4xbf16, #tpu.memory_space<vmem>>, %arg9: memref<32x12xbf16, #tpu.memory_space<vmem>>, %arg10: memref<4x32xbf16, #tpu.memory_space<vmem>>, %arg11: memref<4x1xf32, #tpu.memory_space<vmem>>, %arg12: memref<1x1x1xf32, #tpu.memory_space<vmem>>) attributes {dimension_semantics = [#tpu.dimension_semantics<parallel>, #tpu.dimension_semantics<arbitrary>], iteration_bounds = array<i64: 2, 1>, scalar_prefetch = 0 : i64, scratch_operands = 0 : i64, tpu.core_type = #tpu.core_type<tc>, window_params = [{transform_indices = @transform_0, window_bounds = array<i64: 2>}, {transform_indices = @transform_1, window_bounds = array<i64: 2>}, {transform_indices = @transform_2, window_bounds = array<i64: 1, 4, 256>}, {transform_indices = @transform_3, window_bounds = array<i64: 1, 12, 256>}, {transform_indices = @transform_4, window_bounds = array<i64: 1, 4, 256>}, {transform_indices = @transform_5, window_bounds = array<i64: 1, 32, 1>}, {pipeline_mode = #tpu.pipeline_mode<synchronous>, transform_indices = @transform_6, window_bounds = array<i64: 32, 4>}, {pipeline_mode = #tpu.pipeline_mode<synchronous>, transform_indices = @transform_7, window_bounds = array<i64: 32, 12>}, {pipeline_mode = #tpu.pipeline_mode<synchronous>, transform_indices = @transform_8, window_bounds = array<i64: 4, 32>}, {pipeline_mode = #tpu.pipeline_mode<synchronous>, transform_indices = @transform_9, window_bounds = array<i64: 4, 1>}, {transform_indices = @transform_10, window_bounds = array<i64: 1, 1, 1>}]} {
    %0 = arith.index_cast %arg0 : i32 to index
    %1 = memref.load %arg2[%0] : memref<2xf32, #tpu.memory_space<smem>>
    %2 = arith.index_cast %arg0 : i32 to index
    %3 = memref.load %arg3[%2] : memref<2xf32, #tpu.memory_space<smem>>
    %c0 = arith.constant 0 : index
    %c0_0 = arith.constant 0 : index
    %c0_1 = arith.constant 0 : index
    %4 = vector.load %arg4[%c0, %c0_0, %c0_1] : memref<1x4x256xf32, #tpu.memory_space<vmem>>, vector<1x4x256xf32>
    %5 = vector.shape_cast %4 : vector<1x4x256xf32> to vector<4x256xf32>
    %c0_2 = arith.constant 0 : index
    %c0_3 = arith.constant 0 : index
    %c0_4 = arith.constant 0 : index
    %6 = vector.load %arg6[%c0_2, %c0_3, %c0_4] : memref<1x4x256xf32, #tpu.memory_space<vmem>>, vector<1x4x256xf32>
    %7 = vector.shape_cast %6 : vector<1x4x256xf32> to vector<4x256xf32>
    %8 = vector.broadcast %1 : f32 to vector<4x256xf32>
    %9 = arith.mulf %8, %5 : vector<4x256xf32>
    %10 = vector.broadcast %3 : f32 to vector<4x256xf32>
    %11 = arith.mulf %10, %7 : vector<4x256xf32>
    %12 = arith.addf %9, %11 : vector<4x256xf32>
    %c0_5 = arith.constant 0 : index
    %c0_6 = arith.constant 0 : index
    %13 = vector.load %arg8[%c0_5, %c0_6] : memref<32x4xbf16, #tpu.memory_space<vmem>>, vector<32x4xbf16>
    %14 = arith.truncf %12 : vector<4x256xf32> to vector<4x256xbf16>
    %cst = arith.constant dense<0.000000e+00> : vector<32x256xf32>
    %15 = tpu.matmul %13, %14, %cst {dimension_numbers = #tpu.dot_dimension_numbers<[1], [0], [0], [1], [0, 0, 1, 1], [], []>} : vector<32x4xbf16>, vector<4x256xbf16>, vector<32x256xf32> -> vector<32x256xf32>
    %c0_7 = arith.constant 0 : index
    %c0_8 = arith.constant 0 : index
    %16 = vector.load %arg9[%c0_7, %c0_8] : memref<32x12xbf16, #tpu.memory_space<vmem>>, vector<32x12xbf16>
    %c0_9 = arith.constant 0 : index
    %c0_10 = arith.constant 0 : index
    %c0_11 = arith.constant 0 : index
    %17 = vector.load %arg5[%c0_9, %c0_10, %c0_11] : memref<1x12x256xf32, #tpu.memory_space<vmem>>, vector<1x12x256xf32>
    %18 = vector.shape_cast %17 : vector<1x12x256xf32> to vector<12x256xf32>
    %19 = arith.truncf %18 : vector<12x256xf32> to vector<12x256xbf16>
    %cst_12 = arith.constant dense<0.000000e+00> : vector<32x256xf32>
    %20 = tpu.matmul %16, %19, %cst_12 {dimension_numbers = #tpu.dot_dimension_numbers<[1], [0], [0], [1], [0, 0, 1, 1], [], []>} : vector<32x12xbf16>, vector<12x256xbf16>, vector<32x256xf32> -> vector<32x256xf32>
    %21 = arith.addf %15, %20 : vector<32x256xf32>
    %c0_13 = arith.constant 0 : index
    %c0_14 = arith.constant 0 : index
    %c0_15 = arith.constant 0 : index
    %22 = vector.load %arg7[%c0_13, %c0_14, %c0_15] : memref<1x32x1xf32, #tpu.memory_space<vmem>>, vector<1x32x1xf32>
    %23 = vector.shape_cast %22 : vector<1x32x1xf32> to vector<32x1xf32>
    %24 = vector.broadcast %23 : vector<32x1xf32> to vector<32x256xf32>
    %25 = arith.addf %21, %24 : vector<32x256xf32>
    %cst_16 = arith.constant 0.000000e+00 : f32
    %26 = vector.broadcast %cst_16 : f32 to vector<32x256xf32>
    %27 = arith.maximumf %25, %26 : vector<32x256xf32>
    %c0_17 = arith.constant 0 : index
    %c0_18 = arith.constant 0 : index
    %28 = vector.load %arg10[%c0_17, %c0_18] : memref<4x32xbf16, #tpu.memory_space<vmem>>, vector<4x32xbf16>
    %29 = arith.truncf %27 : vector<32x256xf32> to vector<32x256xbf16>
    %cst_19 = arith.constant dense<0.000000e+00> : vector<4x256xf32>
    %30 = tpu.matmul %28, %29, %cst_19 {dimension_numbers = #tpu.dot_dimension_numbers<[1], [0], [0], [1], [0, 0, 1, 1], [], []>} : vector<4x32xbf16>, vector<32x256xbf16>, vector<4x256xf32> -> vector<4x256xf32>
    %c0_20 = arith.constant 0 : index
    %c0_21 = arith.constant 0 : index
    %31 = vector.load %arg11[%c0_20, %c0_21] : memref<4x1xf32, #tpu.memory_space<vmem>>, vector<4x1xf32>
    %32 = vector.broadcast %31 : vector<4x1xf32> to vector<4x256xf32>
    %33 = arith.addf %30, %32 : vector<4x256xf32>
    %34 = arith.subf %33, %7 : vector<4x256xf32>
    %35 = arith.mulf %34, %34 : vector<4x256xf32>
    %36 = vector.shape_cast %35 : vector<4x256xf32> to vector<1x4x256xf32>
    %cst_22 = arith.constant dense<0.000000e+00> : vector<1xf32>
    %37 = vector.multi_reduction <add>, %36, %cst_22 [1, 2] : vector<1x4x256xf32> to vector<1xf32>
    %38 = vector.shape_cast %37 : vector<1xf32> to vector<1x1x1xf32>
    %39 = vector.extract %38[0, 0, 0] : f32 from vector<1x1x1xf32>
    %c0_i32 = arith.constant 0 : i32
    %40 = arith.cmpi eq, %arg1, %c0_i32 : i32
    %41 = arith.extui %40 : i1 to i32
    %c0_i32_23 = arith.constant 0 : i32
    %42 = arith.cmpi ne, %41, %c0_i32_23 : i32
    scf.if %42 {
      %cst_30 = arith.constant 0.000000e+00 : f32
      %47 = vector.broadcast %cst_30 : f32 to vector<1x1x1xf32>
      %c0_31 = arith.constant 0 : index
      %c0_32 = arith.constant 0 : index
      %c0_33 = arith.constant 0 : index
      %48 = vector.load %arg12[%c0_31, %c0_32, %c0_33] : memref<1x1x1xf32, #tpu.memory_space<vmem>>, vector<1x1x1xf32>
      tpu.vector_store %arg12[%c0_31, %c0_32, %c0_33], %47 {strides = array<i32>} : memref<1x1x1xf32, #tpu.memory_space<vmem>>, vector<1x1x1xf32>,
    } else {
    }
    %c0_24 = arith.constant 0 : index
    %c0_25 = arith.constant 0 : index
    %c0_26 = arith.constant 0 : index
    %43 = vector.load %arg12[%c0_24, %c0_25, %c0_26] : memref<1x1x1xf32, #tpu.memory_space<vmem>>, vector<1x1x1xf32>
    %44 = vector.broadcast %39 : f32 to vector<1x1x1xf32>
    %45 = arith.addf %43, %44 : vector<1x1x1xf32>
    %c0_27 = arith.constant 0 : index
    %c0_28 = arith.constant 0 : index
    %c0_29 = arith.constant 0 : index
    %46 = vector.load %arg12[%c0_27, %c0_28, %c0_29] : memref<1x1x1xf32, #tpu.memory_space<vmem>>, vector<1x1x1xf32>
    tpu.vector_store %arg12[%c0_27, %c0_28, %c0_29], %45 {strides = array<i32>} : memref<1x1x1xf32, #tpu.memory_space<vmem>>, vector<1x1x1xf32>,
    return
  }
  func.func @transform_0(%arg0: i32, %arg1: i32) -> i32 {
    %c0_i32 = arith.constant 0 : i32
    %c0_i32_0 = arith.constant 0 : i32
    return %c0_i32 : i32
  }
  func.func @transform_1(%arg0: i32, %arg1: i32) -> i32 {
    %c0_i32 = arith.constant 0 : i32
    %c0_i32_0 = arith.constant 0 : i32
    return %c0_i32 : i32
  }
  func.func @transform_2(%arg0: i32, %arg1: i32) -> (i32, i32, i32) {
    %c0_i32 = arith.constant 0 : i32
    %c0_i32_0 = arith.constant 0 : i32
    return %arg0, %c0_i32, %arg1 : i32, i32, i32
  }
  func.func @transform_3(%arg0: i32, %arg1: i32) -> (i32, i32, i32) {
    %c0_i32 = arith.constant 0 : i32
    %c0_i32_0 = arith.constant 0 : i32
    return %arg0, %c0_i32, %arg1 : i32, i32, i32
  }
  func.func @transform_4(%arg0: i32, %arg1: i32) -> (i32, i32, i32) {
    %c0_i32 = arith.constant 0 : i32
    %c0_i32_0 = arith.constant 0 : i32
    return %arg0, %c0_i32, %arg1 : i32, i32, i32
  }
  func.func @transform_5(%arg0: i32, %arg1: i32) -> (i32, i32, i32) {
    %c0_i32 = arith.constant 0 : i32
    %c0_i32_0 = arith.constant 0 : i32
    %c0_i32_1 = arith.constant 0 : i32
    return %arg0, %c0_i32, %c0_i32_0 : i32, i32, i32
  }
  func.func @transform_6(%arg0: i32, %arg1: i32) -> (i32, i32) {
    %c0_i32 = arith.constant 0 : i32
    %c0_i32_0 = arith.constant 0 : i32
    %c0_i32_1 = arith.constant 0 : i32
    return %c0_i32, %c0_i32_0 : i32, i32
  }
  func.func @transform_7(%arg0: i32, %arg1: i32) -> (i32, i32) {
    %c0_i32 = arith.constant 0 : i32
    %c0_i32_0 = arith.constant 0 : i32
    %c0_i32_1 = arith.constant 0 : i32
    return %c0_i32, %c0_i32_0 : i32, i32
  }
  func.func @transform_8(%arg0: i32, %arg1: i32) -> (i32, i32) {
    %c0_i32 = arith.constant 0 : i32
    %c0_i32_0 = arith.constant 0 : i32
    %c0_i32_1 = arith.constant 0 : i32
    return %c0_i32, %c0_i32_0 : i32, i32
  }
  func.func @transform_9(%arg0: i32, %arg1: i32) -> (i32, i32) {
    %c0_i32 = arith.constant 0 : i32
    %c0_i32_0 = arith.constant 0 : i32
    %c0_i32_1 = arith.constant 0 : i32
    return %c0_i32, %c0_i32_0 : i32, i32
  }
  func.func @transform_10(%arg0: i32, %arg1: i32) -> (i32, i32, i32) {
    %c0_i32 = arith.constant 0 : i32
    %c0_i32_0 = arith.constant 0 : i32
    %c0_i32_1 = arith.constant 0 : i32
    return %arg0, %c0_i32, %c0_i32_0 : i32, i32, i32
  }
}

</mosaic_0001>

<bundles_post_ra>
// kernel: _lambda_.1
= control target key start
LH: loop header
LB: loop body
LE: loop exit
PB: predicated region body
PF: predicated region fallthrough
CT: control target
= control target key end

     0   :  { %15 = vsyncpa [#allocation3], 0  ;;  %s1284_s0 = inlined_call_operand.vmem [shape: f32[2], index: 0, kind: input, shape index: {}]   ;;  %s1285_s1 = inlined_call_operand.vmem [shape: f32[2], index: 1, kind: input, shape index: {}]   ;;  %s1286_s2 = inlined_call_operand.vmem [shape: f32[2,4,256], index: 2, kind: input, shape index: {}]   ;;  %s1287_s3 = inlined_call_operand.vmem [shape: f32[2,12,256], index: 3, kind: input, shape index: {}]   ;;  %s1288_s4 = inlined_call_operand.vmem [shape: f32[2,4,256], index: 4, kind: input, shape index: {}]   ;;  %s1289_s5 = inlined_call_operand.vmem [shape: f32[2,32,1], index: 5, kind: input, shape index: {}]   ;;  %s1290_s6 = inlined_call_operand.vmem [shape: bf16[32,4], index: 6, kind: input, shape index: {}]   ;;  %s1291_s7 = inlined_call_operand.vmem [shape: bf16[32,12], index: 7, kind: input, shape index: {}]   ;;  %s1292_s8 = inlined_call_operand.vmem [shape: bf16[4,32], index: 8, kind: input, shape index: {}]   ;;  %s1293_s9 = inlined_call_operand.vmem [shape: f32[4,1], index: 9, kind: input, shape index: {}]   ;;  %s1294_s10 = inlined_call_operand.vmem [shape: f32[2,1,1], index: 10, kind: output, shape index: {}]  }
   0x1   :  { %16 = vsyncpa [#allocation5], 0  ;;  %s1164_s13 = smov 0   ;;  %s1166_s14 = smov 0  }
   0x2   :  { %s1168_s15 = smov 0  }
   0x3 LB: > { %s945_s16 = sadd.s32 4294967295, %s1103_s15   ;;  %s34_s17 = sadd.s32 1, %s1099_s14  ;;  %s1103_s15 = sphi %s1168_s15, %s22_s15   ;;  %s1099_s14 = sphi %s1166_s14, %s1304_s14   ;;  %s1095_s13 = sphi %s1164_s13, %s1303_s13  }
   0x4   : > { %p36_p0 = scmp.ge.s32.totalorder %s34_s17, 2  ;;  %p947_p1 = scmp.ge.s32.totalorder %s1103_s15, 1 }
   0x5   : > { %p301_p2 = scmp.lt.s32.totalorder %s1103_s15, 3  ;;  %p1189_p4 = scmp.eq.s32.totalorder %s945_s16, 0 }
   0x6   : > { %s1306_s17 = smov (%p36_p0, %s34_s17), 0  ;;  %s314_s22 = sshll.u32 %s1284_s0, 4  ;;  %s315_s22 = int_to_ptr.vmem [resolvable:$true] %s314_s22 }
   0x7   : > { %p1185_p3 = pnand %p947_p1, %p301_p2  ;;  %s325_s25 = sshll.u32 %s1285_s1, 4  ;;  %s326_s25 = int_to_ptr.vmem [resolvable:$true] %s325_s25 }
   0x8   : > { %s1299_s19 = scalar_select %p1189_p4, 1, 0 }
   0x9   : > { %s1298_s18 = scalar_select %p1185_p3, 1, 0 }
   0xa   : > { %p997_p5 = pneg %p1185_p3  ;;  %s1043_s27 = scalar_lea.vmem %s315_s22, 16 }
   0xb   : > { %p1044_p7 = scmp.ne.s32.totalorder %s315_s22, %s1043_s27  ;;  %p1051_p11 = scmp.lt.s32.totalorder %s315_s22, %s315_s22 }
   0xc   : > { %p1203_p6 = pnand %p1189_p4, %p997_p5  ;;  %p1052_p12 = scmp.lt.s32.totalorder %s1043_s27, %s1043_s27 }
   0xe   : > { %p1045_p8 = pneg %p1203_p6  ;;  %p1053_p13 = por %p1052_p12, %p1051_p11 }
  0x10   : > { %p1046_p9 = pnand %p1045_p8, %p1044_p7 }
  0x12   : > { %p1047_p10 = pneg %p1046_p9 }
  0x14   : > { %p1054_p0 = pnand %p1053_p13, %p1047_p10 }
  0x16   : > { %1057 = shalt.err (!%p1054_p0)
}
  0x17   : > { %s1105_s28 = smov [#allocation2]   ;;  %s1058_s29 = scalar_lea.vmem %s326_s25, 16 }
  0x18   : > { %1000 = dma.vmem_to_smem (!%p1203_p6), %s315_s22, 16, %s1105_s28, [#allocation3]  }
  0x19   : > { %p1059_p1 = scmp.ne.s32.totalorder %s326_s25, %s1058_s29  ;;  %p1066_p4 = scmp.lt.s32.totalorder %s326_s25, %s326_s25 }
  0x1a   : > { %p1067_p3 = scmp.lt.s32.totalorder %s1058_s29, %s1058_s29 }
  0x1b   : > { %p1061_p2 = pnand %p1059_p1, %p1045_p8 }
  0x1c   : > { %p1068_p7 = por %p1067_p3, %p1066_p4 }
  0x1d   : > { %p1062_p5 = pneg %p1061_p2 }
  0x1f   : > { %p1069_p9 = pnand %p1068_p7, %p1062_p5 }
  0x21   : > { %1072 = shalt.err (!%p1069_p9)
}
  0x22   : > { %s1106_s30 = smov [#allocation4]   ;;  %p1301_p10 = scmp.ne.s32.totalorder %s1298_s18, 0 }
  0x23   : > { %1003 = dma.vmem_to_smem (!%p1203_p6), %s326_s25, 16, %s1106_s30, [#allocation5]  }
  0x24   : > { %397 = sbr.rel (%p1301_p10) target bundleno = 733 (0x2dd), region = 60  ;;  %p1302_p11 = scmp.ne.s32.totalorder (!%p1301_p10), %s1299_s19, 0 }
  0x2b   : > { %1086 = dma.done.wait (%p1302_p11), [#allocation3], 16  }
  0x2c   : > { %1088 = vsyncadd (%p1302_p11), [#allocation3], 4294967280 }
  0x2d   : > { %1090 = dma.done.wait (%p1302_p11), [#allocation5], 16  }
  0x2e   : > { %1092 = vsyncadd (%p1302_p11), [#allocation5], 4294967280 }
  0x2f   : > { %407 = sfence }
  0x30   : > { %p466_p3 = scmp.lt.s32.totalorder %s1095_s13, 1  ;;  %s504_s11 = sld [smem:[#allocation2 + %s1095_s13]]  ;;  %v1107_v0 = vmov 0   ;;  %vm549_vm0 = vcmask 1045504   ;;  %v1038_v17 = vld [vmem:[%s1291_s7] sm:$0xff]   ;;  %vm626_vm1 = vcmask 1041408  }
  0x31   : > { %588 = vmatprep.mubr.bf16.mxu1 %v1107_v0  ;;  %s505_s12 = sld [smem:[#allocation4 + %s1095_s13]]  ;;  %665 = vmatprep.mubr.bf16.mxu0 %v1107_v0  ;;  %vm542_vm2 = vcmask 97280   ;;  %v731_v24 = vld [vmem:[%s1293_s9] sm:$0xf]  ;;  %vm619_vm3 = vcmask 31744   ;;  %v1040_v26 = vld [vmem:[%s1291_s7 + $0x8] sm:$0xff]  }
  0x32   : > { %s1308_s13 = smov (!%p466_p3, %s1095_s13), 1  ;;  %1036 = vset.pattern.permute.xlu0 %v1107_v0  ;;  %1037 = vset.pattern.permute.xlu1 %v1107_v0  ;;  %v1039_v25 = vld [vmem:[%s1290_s6] sm:$0xff]   ;;  %v1041_v27 = vld [vmem:[%s1290_s6 + $0x8] sm:$0xff]   ;;  %vm737_vm4 = vcmask 261120   ;;  %vm789_vm5 = vcmask 1043456   ;;  %vm806_vm6 = vcmask 0  }
  0x33   : > { %s976_s16 = sshll.u32 %s1308_s13, 5  ;;  %s975_s18 = sshll.u32 %s1308_s13, 3 }
  0x34   : > { %s483_s21 = scalar_lea.vmem %s1287_s3, %s976_s16  ;;  %s473_s24 = scalar_lea.vmem %s1286_s2, %s975_s18 }
  0x35   : > { %v527_v1 = vld [vmem:[%s483_s21 + $0x8] sm:$0xff]  ;;  %v529_v2 = vld [vmem:[%s483_s21 + $0x18] sm:$0xf]  ;;  %v526_v3 = vld [vmem:[%s483_s21] sm:$0xff]  ;;  %s493_s27 = scalar_lea.vmem %s1288_s4, %s975_s18  ;;  %s499_s30 = scalar_lea.vmem %s1289_s5, %s976_s16 }
  0x36   : > { %v508_v4 = vstv %s504_s11  ;;  %v531_v5 = vpack.c.bf16 %v529_v2, %v527_v1  ;;  %v528_v6 = vld [vmem:[%s483_s21 + $0x10] sm:$0xf]  ;;  %v506_v7 = vld [vmem:[%s473_s24] sm:$0xff]  ;;  %v687_v18 = vld [vmem:[%s499_s30 + $0x8] sm:$0xff]  ;;  %s502_s29 = scalar_lea.vmem %s1294_s10, %s1308_s13 }
  0x37   : > { %v1243_v8 = vld [vmem:[%s493_s27] sm:$0xff]  ;;  %v510_v9 = vstv %s505_s12  ;;  %v530_v10 = vpack.c.bf16 %v528_v6, %v526_v3  ;;  %v509_v11 = vmul.f32 %v508_v4, %v506_v7  ;;  %v688_v14 = vld [vmem:[%s499_s30 + $0x10] sm:$0xff]  ;;  %v689_v19 = vld [vmem:[%s499_s30 + $0x18] sm:$0xff] }
  0x38   : > { %v511_v12 = vmul.f32 %v510_v9, %v1243_v8  ;;  %v686_v13 = vld [vmem:[%s499_s30] sm:$0xff]  ;;  %964 = vmatprep.subr.msk.bf16.mxu1 %vm549_vm0, %v531_v5  ;;  %702 = vperm.xlu1 %1037, %v688_v14  }
  0x39   : > { %692 = vperm.xlu0 %1036, %v686_v13   ;;  %v551_v15 = vsel %vm549_vm0, %v530_v10, 0  ;;  %v726_v13 = vld [vmem:[%s1292_s8] sm:$0x3] }
  0x3a   : > { %v512_v16 = vadd.f32 %v511_v12, %v509_v11  ;;  %557 = vmatpush1.bf16.msra.mxu1 %v551_v15 }
  0x3c   : > { %v518_v20 = vcombine.high %v512_v16, %v512_v16  ;;  %v520_v21 = vpack.c.bf16 %v512_v16, %v512_v16  ;;  %707 = vperm.xlu1 %1037, %v689_v19   ;;  %v783_v16 = vcombine.high %v1243_v8, %v1243_v8 }
  0x3d   : > { %697 = vperm.xlu0 %1036, %v687_v18   ;;  %965 = vmatmul.mubr.msk.bf16.vlgmr.msra.gmra.mrb[0].mxu1 %vm542_vm2, %v1038_v17 }
  0x3e   : > { %v521_v22 = vpack.c.bf16 %v518_v20, %v518_v20  ;;  %v628_v23 = vsel %vm626_vm1, %v520_v21, 0  ;;  %598 = vmatprep.mubr.bf16.mxu1 %v1107_v0 }
  0x40   : > { %969 = vmatprep.subr.msk.bf16.mxu0 %vm626_vm1, %v521_v22 }
  0x41   : > { %634 = vmatpush1.bf16.msra.mxu0 %v628_v23  ;;  %734 = vperm.xlu0 %1036, %v731_v24  }
  0x44   : > { %970 = vmatmul.mubr.msk.bf16.vlgmr.msra.gmra.mrb[0].mxu0 %vm619_vm3, %v1039_v25 }
  0x45   : > { %675 = vmatprep.mubr.bf16.mxu0 %v1107_v0  ;;  %966 = vmatmul.mubr.msk.bf16.gmra.mrb[4].mxu1 %vm542_vm2, %v1040_v26 }
  0x46   : > { %773 = vmatprep.mubr.bf16.mxu1 %v1107_v0 }
  0x4c   : > { %971 = vmatmul.mubr.msk.bf16.gmra.mrb[4].mxu0 %vm619_vm3, %v1041_v27 }
  0xb7   : > { %v703_v50 = vpop.permute.xlu1 %702 }
  0xb8   : > { %v693_v32 = vpop.permute.xlu0 %692 }
  0xbb   : > { %v708_v1 = vpop.permute.xlu1 %707 }
  0xbc   : > { %v698_v43 = vpop.permute.xlu0 %697 }
  0xc0   : > { %v735_v14 = vpop.permute.xlu0 %734 }
 0x110   : > { %v590_v28 = vpop.f32.mrb[0].mxu1 }
 0x111   : > { %v592_v29 = vpop.f32.mrb[1].mxu1 }
 0x112   : > { %v594_v30 = vpop.f32.mrb[2].mxu1 }
 0x113   : > { %v596_v31 = vpop.f32.mrb[3].mxu1 }
 0x117   : > { %v667_v33 = vpop.f32.mrb[0].mxu0 }
 0x118   : > { %v668_v34 = vadd.f32 %v667_v33, %v590_v28  ;;  %v669_v35 = vpop.f32.mrb[1].mxu0  ;;  %v600_v38 = vpop.f32.mrb[4].mxu1 }
 0x119   : > { %v670_v36 = vadd.f32 %v669_v35, %v592_v29  ;;  %v671_v37 = vpop.f32.mrb[2].mxu0  ;;  %v602_v42 = vpop.f32.mrb[5].mxu1  ;;  %v1108_v29 = vmov 0.0  }
 0x11a   : > { %v710_v39 = vadd.f32 %v693_v32, %v668_v34  ;;  %v672_v40 = vadd.f32 %v671_v37, %v594_v30  ;;  %v673_v41 = vpop.f32.mrb[3].mxu0  ;;  %v604_v46 = vpop.f32.mrb[6].mxu1  ;;  %807 = vst.msk [vmem:[%s502_s29] sm:$0x1] %vm806_vm6, %v1108_v29 }
 0x11b   : > { %v711_v44 = vadd.f32 %v693_v32, %v670_v36  ;;  %v674_v45 = vadd.f32 %v673_v41, %v596_v31  ;;  %v606_v48 = vpop.f32.mrb[7].mxu1 }
 0x11c   : > { %v712_v47 = vadd.f32 %v698_v43, %v672_v40  ;;  %v718_v51 = vmax.f32 %v710_v39, 0.0 }
 0x11d   : > { %v713_v49 = vadd.f32 %v698_v43, %v674_v45  ;;  %v719_v53 = vmax.f32 %v711_v44, 0.0 }
 0x11e   : > { %v720_v52 = vmax.f32 %v712_v47, 0.0 }
 0x11f   : > { %v721_v54 = vmax.f32 %v713_v49, 0.0  ;;  %v677_v55 = vpop.f32.mrb[4].mxu0 }
 0x120   : > { %v727_v56 = vpack.c.bf16 %v720_v52, %v718_v51  ;;  %v678_v57 = vadd.f32 %v677_v55, %v600_v38  ;;  %v679_v58 = vpop.f32.mrb[5].mxu0 }
 0x121   : > { %v680_v59 = vadd.f32 %v679_v58, %v602_v42  ;;  %v681_v60 = vpop.f32.mrb[6].mxu0  ;;  %v728_v61 = vpack.c.bf16 %v721_v54, %v719_v53  ;;  %v808_v36 = vld [vmem:[%s502_s29] sm:$0x1] }
 0x122   : > { %v714_v62 = vadd.f32 %v703_v50, %v678_v57  ;;  %v682_v63 = vadd.f32 %v681_v60, %v604_v46  ;;  %v683_v0 = vpop.f32.mrb[7].mxu0 }
 0x123   : > { %v715_v2 = vadd.f32 %v703_v50, %v680_v59  ;;  %v684_v3 = vadd.f32 %v683_v0, %v606_v48  ;;  %741 = vmatprep.subr.bf16.mxu1 %v728_v61 }
 0x124   : > { %v716_v4 = vadd.f32 %v708_v1, %v682_v63  ;;  %742 = vmatpush1.bf16.msra.mxu1 %v727_v56  ;;  %v722_v6 = vmax.f32 %v714_v62, 0.0 }
 0x125   : > { %v717_v5 = vadd.f32 %v708_v1, %v684_v3  ;;  %v723_v9 = vmax.f32 %v715_v2, 0.0 }
 0x126   : > { %v724_v7 = vmax.f32 %v716_v4, 0.0 }
 0x127   : > { %v725_v10 = vmax.f32 %v717_v5, 0.0 }
 0x128   : > { %v729_v11 = vpack.c.bf16 %v724_v7, %v722_v6 }
 0x129   : > { %v730_v12 = vpack.c.bf16 %v725_v10, %v723_v9 }
 0x12b   : > { %743 = vmatprep.subr.bf16.mxu1 %v730_v12 }
 0x12c   : > { %744 = vmatpush1.bf16.msra.mxu1 %v729_v11 }
 0x12f   : > { %972 = vmatmul.mubr.msk.bf16.vlgmr.msra.gmra.mrb[8].mxu1 %vm737_vm4, %v726_v13 }
 0x202   : > { %v775_v15 = vpop.f32.mrb[8].mxu1 }
 0x203   : > { %v776_v17 = vadd.f32 %v775_v15, %v735_v14  ;;  %v777_v18 = vpop.f32.mrb[9].mxu1 }
 0x204   : > { %v778_v19 = vadd.f32 %v777_v18, %v735_v14  ;;  %v779_v20 = vpop.f32.mrb[10].mxu1 }
 0x205   : > { %v785_v21 = vsub.f32 %v776_v17, %v1243_v8  ;;  %v780_v22 = vpop.f32.mrb[11].mxu1 }
 0x206   : > { %v786_v23 = vsub.f32 %v778_v19, %v783_v16 }
 0x207   : > { %v787_v24 = vmul.f32 %v785_v21, %v785_v21 }
 0x208   : > { %v788_v25 = vmul.f32 %v786_v23, %v786_v23 }
 0x209   : > { %v790_v26 = vsel %vm789_vm5, %v787_v24, 0.0 }
 0x20a   : > { %v791_v27 = vsel %vm789_vm5, %v788_v25, 0.0 }
 0x20b   : > { %v792_v28 = vadd.f32 %v791_v27, %v790_v26 }
 0x20d   : > { %793 = vadd.xlane.f32.xlu1 %v792_v28 }
 0x29a   : > { %v794_v30 = vpop.xlane.xlu1 %793 }
 0x29b   : > { %v795_v31 = vrot.slane %v794_v30, 4 }
 0x29d   : > { %v796_v32 = vadd.f32 %v795_v31, %v794_v30 }
 0x29f   : > { %v797_v8 = vrot.slane %v796_v32, 2 }
 0x2a1   : > { %v798_v33 = vadd.f32 %v797_v8, %v796_v32 }
 0x2a3   : > { %v799_v34 = vrot.slane %v798_v33, 1 }
 0x2a5   : > { %v800_v35 = vadd.f32 %v799_v34, %v798_v33 }
 0x2a7   : > { %987 = vpush %v800_v35 }
 0x2d8   : > { %s988_s30 = spop %987 }
 0x2d9   : > { %v809_v37 = vstv %s988_s30 }
 0x2da   : > { %v810_v38 = vadd.f32 %v809_v37, %v808_v36 }
 0x2dc   : > { %812 = vst.msk [vmem:[%s502_s29] sm:$0x1] %vm806_vm6, %v810_v38 }
 0x2dd PF: > { %s22_s15 = sadd.s32 1, %s1103_s15   ;;  %s1303_s13 = smov %s1099_s14 }
 0x2de   : > { %p19_p4 = scmp.ge.s32.totalorder %s22_s15, 4   ;;  %s1304_s14 = smov %s1306_s17 }
 0x2e0   :  { %21 = sbr.rel (!%p19_p4) target bundleno = 3 (0x3), region = 112 }
 0x2e7   :  { %830 = vsyncpa [#allocation3], 1 }
 0x2e8   :  { %832 = vsyncpa [#allocation3 + $0x1], 1 }
 0x2e9   :  { %833 = vsyncpa [#allocation5], 1 }

</bundles_post_ra>
